<compile_context>
chip_gen: v5e
topology: v5e:2x2
jax: 0.10.0
libtpu: 0.0.40
codegen_flags: <defaults>
</compile_context>

<pallas_src>
import jax
import jax.numpy as jnp
import numpy as np
from jax.experimental import pallas as pl
from jax.experimental.pallas import tpu as pltpu


def _wlp_kernel(idx_ref, x_ref, y_ref, w1_ref, b1_ref, w2_ref, b2_ref,
                loss_ref, acc_res, acc_y, acc_cnt):
    """One grid step over a batch tile.

    acc_res: (G, D) f32 running sum of gated features per group
    acc_y:   (G, Y) f32 running sum of one-hot targets per group
    acc_cnt: (G, 1) f32 running per-group counts
    """
    i = pl.program_id(0)
    nsteps = pl.num_programs(0)

    @pl.when(i == 0)
    def _init():
        acc_res[...] = jnp.zeros_like(acc_res)
        acc_y[...] = jnp.zeros_like(acc_y)
        acc_cnt[...] = jnp.zeros_like(acc_cnt)

    # bf16 in HBM; compute in f32.
    x = x_ref[...].astype(jnp.float32)          # (TB, D)
    y = y_ref[...].astype(jnp.float32)          # (TB, Y)
    idx = idx_ref[...]                          # (TB, 1) int32 group ids

    tb = x.shape[0]
    g = acc_res.shape[0]

    # Gate: sigmoid(Linear(x)) * x.  The matvec goes to the MXU (idle slot)
    # instead of burning VPU + cross-lane XLU work.
    gate_logit = jnp.dot(x, w1_ref[...], preferred_element_type=jnp.float32)
    gate = jax.nn.sigmoid(gate_logit + b1_ref[0, 0])          # (TB, 1)
    a = gate * x                                              # (TB, D)

    # One-hot (TB, G) built in-register from the index column; padded rows
    # carry idx == G and match no column, so they contribute nothing.
    onehot = (jax.lax.broadcasted_iota(jnp.int32, (tb, g), 1) == idx)
    onehot = onehot.astype(jnp.float32)

    contract_batch = (((0,), (0,)), ((), ()))                 # onehot^T @ rhs
    acc_res[...] += jax.lax.dot_general(onehot, a, contract_batch,
                                        preferred_element_type=jnp.float32)
    acc_y[...] += jax.lax.dot_general(onehot, y, contract_batch,
                                      preferred_element_type=jnp.float32)
    acc_cnt[...] += jax.lax.dot_general(onehot, jnp.ones((tb, 1), jnp.float32),
                                        contract_batch,
                                        preferred_element_type=jnp.float32)

    @pl.when(i == nsteps - 1)
    def _finalize():
        # counts >= 1 by construction (groups come from unique labels).
        inv_cnt = pl.reciprocal(acc_cnt[...], approx=False)   # (G, 1)
        res = acc_res[...] * inv_cnt                          # (G, D)
        y_grp = acc_y[...] * inv_cnt                          # (G, Y)

        # prediction = softmax(Linear2(res), dim=1)
        logits = jnp.dot(res, w2_ref[...],
                         preferred_element_type=jnp.float32) + b2_ref[...]
        m = jnp.max(logits, axis=-1, keepdims=True)
        e = jnp.exp(logits - m)
        pred = e * pl.reciprocal(jnp.sum(e, axis=-1, keepdims=True),
                                 approx=False)                # (G, Y)

        # nn.CrossEntropyLoss: log_softmax of (already softmaxed) pred,
        # weighted by the soft targets, mean over groups (faithful to module).
        m2 = jnp.max(pred, axis=-1, keepdims=True)
        z = pred - m2
        log_sm = z - jnp.log(jnp.sum(jnp.exp(z), axis=-1, keepdims=True))
        per_group = -jnp.sum(y_grp * log_sm, axis=-1, keepdims=True)  # (G, 1)
        loss_ref[...] = (jnp.sum(per_group, axis=0, keepdims=True)
                         * (1.0 / jnp.float32(g)))                    # (1, 1)


def weighted_linear_probing_loss(x, labels, y, w1, b1, w2, b2, tb=None):
    """Wrapper: host-side group dedup, padding, and the streamed Pallas call."""
    labels = jnp.asarray(labels)
    # Data-dependent group count (torch.unique equivalent).  Host sync + one
    # compile per distinct G; unavoidable since G fixes accumulator shapes.
    unique, inv = jnp.unique(labels, return_inverse=True)
    inv = inv.reshape(-1).astype(jnp.int32)
    G = int(unique.shape[0])

    B, D = x.shape
    Y = y.shape[1]

    # Batch tile: multiple of 16 sublanes (native bf16 tiling), capped so
    # double-buffered tiles + resident accumulators stay far under v7x's
    # 64 MiB VMEM.
    if tb is None:
        tb = min(B, 512)
    tb = max(16, (min(tb, B) // 16) * 16)
    n_tiles = pl.cdiv(B, tb)
    Bp = n_tiles * tb

    # bf16 streaming for the big per-sample tensors; group ids as int32 column.
    x_s = x.astype(jnp.bfloat16)
    y_s = y.astype(jnp.bfloat16)
    if Bp != B:
        pad = Bp - B
        x_s = jnp.pad(x_s, ((0, pad), (0, 0)))
        y_s = jnp.pad(y_s, ((0, pad), (0, 0)))
        inv = jnp.pad(inv, (0, pad), constant_values=G)   # matches no group
    idx = inv.reshape(Bp, 1)

    w1t = jnp.asarray(w1, jnp.float32).reshape(1, D).T    # (D, 1)
    b1c = jnp.asarray(b1, jnp.float32).reshape(1, 1)
    w2c = jnp.asarray(w2, jnp.float32).reshape(D, Y)
    b2c = jnp.asarray(b2, jnp.float32).reshape(1, Y)

    out = pl.pallas_call(
        _wlp_kernel,
        out_shape=jax.ShapeDtypeStruct((1, 1), jnp.float32),
        grid=(n_tiles,),
        in_specs=[
            pl.BlockSpec((tb, 1), lambda i: (i, 0)),            # group ids
            pl.BlockSpec((tb, D), lambda i: (i, 0)),            # x tile (bf16)
            pl.BlockSpec((tb, Y), lambda i: (i, 0)),            # y tile (bf16)
            pl.BlockSpec((D, 1), lambda i: (0, 0)),             # w1^T, resident
            pl.BlockSpec(memory_space=pltpu.MemorySpace.SMEM),  # b1 scalar
            pl.BlockSpec((D, Y), lambda i: (0, 0)),             # w2, resident
            pl.BlockSpec((1, Y), lambda i: (0, 0)),             # b2, resident
        ],
        out_specs=pl.BlockSpec((1, 1), lambda i: (0, 0)),
        scratch_shapes=[
            pltpu.VMEM((G, D), jnp.float32),   # per-group sum of gated features
            pltpu.VMEM((G, Y), jnp.float32),   # per-group sum of targets
            pltpu.VMEM((G, 1), jnp.float32),   # per-group counts
        ],
        compiler_params=pltpu.CompilerParams(
            dimension_semantics=("arbitrary",),     # reduction over batch tiles
            vmem_limit_bytes=48 * 1024 * 1024,
        ),
    )(idx, x_s, y_s, w1t, b1c, w2c, b2c)
    return out[0, 0], unique


def reference_loss(x, labels, y, w1, b1, w2, b2):
    """Pure-JAX reference mirroring the PyTorch forward (and the bf16 feed)."""
    hp = jax.lax.Precision.HIGHEST
    xq = x.astype(jnp.bfloat16).astype(jnp.float32)
    yq = y.astype(jnp.bfloat16).astype(jnp.float32)
    unique, inv = jnp.unique(labels, return_inverse=True)
    G = int(unique.shape[0])
    onehot = (inv.reshape(-1)[None, :] == jnp.arange(G)[:, None]).astype(jnp.float32)
    gate = jax.nn.sigmoid(jnp.dot(xq, w1.T, precision=hp) + b1)   # (B, 1)
    a = gate * xq
    counts = onehot.sum(axis=1, keepdims=True)
    res = jnp.dot(onehot, a, precision=hp) / counts
    pred = jax.nn.softmax(jnp.dot(res, w2, precision=hp) + b2, axis=1)
    y_grp = jnp.dot(onehot, yq, precision=hp) / counts
    logp = jax.nn.log_softmax(pred, axis=1)
    return jnp.mean(-jnp.sum(y_grp * logp, axis=1))


if __name__ == "__main__":
    B, D, Y = 32, 32, 4          # batch, input_dim, y_dim (hidden_dim unused)

    key = jax.random.PRNGKey(0)
    kx, ky, kw1, kb1, kw2, kb2 = jax.random.split(key, 6)

    x = jax.random.normal(kx, (B, D), dtype=jnp.float32)
    labels = jnp.array([3, 7, 3, 5, 7, 7, 5, 3] * (B // 8), dtype=jnp.int32)  # 3 groups
    classes = jax.random.randint(ky, (B,), 0, Y)
    y = jax.nn.one_hot(classes, Y, dtype=jnp.float32)

    # Deterministic parameter init mimicking nn.Linear (uniform +-1/sqrt(fan_in)).
    bound = 1.0 / np.sqrt(D)
    w1 = jax.random.uniform(kw1, (1, D), jnp.float32, -bound, bound)     # Linear(D, 1).weight
    b1 = jax.random.uniform(kb1, (1, 1), jnp.float32, -bound, bound)     # Linear(D, 1).bias
    w2_t = jax.random.uniform(kw2, (Y, D), jnp.float32, -bound, bound)   # Linear(D, Y).weight
    b2 = jax.random.uniform(kb2, (1, Y), jnp.float32, -bound, bound)     # Linear(D, Y).bias
    w2 = w2_t.T                                                          # (D, Y) for x @ W

    # tb=16 -> grid=(2,) so the tiled accumulate + epilogue path is exercised.
    loss, unique = weighted_linear_probing_loss(x, labels, y, w1, b1, w2, b2, tb=16)
    loss = jax.block_until_ready(loss)

    ref = reference_loss(x, labels, y, w1, b1, w2, b2)
    assert np.allclose(np.asarray(loss), np.asarray(ref), rtol=1e-4, atol=1e-5), (loss, ref)

    print("KERNEL_OK")
</pallas_src>

<mosaic_0001>
module attributes {stable_mosaic.version = 11 : i64} {
  func.func @_wlp_kernel(%arg0: i32, %arg1: memref<16x1xi32, #tpu.memory_space<vmem>>, %arg2: memref<16x32xbf16, #tpu.memory_space<vmem>>, %arg3: memref<16x4xbf16, #tpu.memory_space<vmem>>, %arg4: memref<32x1xf32, #tpu.memory_space<vmem>>, %arg5: memref<1x1xf32, #tpu.memory_space<smem>>, %arg6: memref<32x4xf32, #tpu.memory_space<vmem>>, %arg7: memref<1x4xf32, #tpu.memory_space<vmem>>, %arg8: memref<1x1xf32, #tpu.memory_space<vmem>>, %arg9: memref<3x32xf32, #tpu.memory_space<vmem>>, %arg10: memref<3x4xf32, #tpu.memory_space<vmem>>, %arg11: memref<3x1xf32, #tpu.memory_space<vmem>>) attributes {dimension_semantics = [#tpu.dimension_semantics<arbitrary>], iteration_bounds = array<i64: 2>, scalar_prefetch = 0 : i64, scratch_operands = 3 : i64, tpu.core_type = #tpu.core_type<tc>, window_params = [{transform_indices = @transform_0, window_bounds = array<i64: 16, 1>}, {transform_indices = @transform_1, window_bounds = array<i64: 16, 32>}, {transform_indices = @transform_2, window_bounds = array<i64: 16, 4>}, {pipeline_mode = #tpu.pipeline_mode<synchronous>, transform_indices = @transform_3, window_bounds = array<i64: 32, 1>}, {transform_indices = @transform_4, window_bounds = array<i64: 1, 1>}, {pipeline_mode = #tpu.pipeline_mode<synchronous>, transform_indices = @transform_5, window_bounds = array<i64: 32, 4>}, {pipeline_mode = #tpu.pipeline_mode<synchronous>, transform_indices = @transform_6, window_bounds = array<i64: 1, 4>}, {pipeline_mode = #tpu.pipeline_mode<synchronous>, transform_indices = @transform_7, window_bounds = array<i64: 1, 1>}]} {
    %c0_i32 = arith.constant 0 : i32
    %0 = arith.cmpi eq, %arg0, %c0_i32 : i32
    %1 = arith.extui %0 : i1 to i32
    %c0_i32_0 = arith.constant 0 : i32
    %2 = arith.cmpi ne, %1, %c0_i32_0 : i32
    scf.if %2 {
      %cst_28 = arith.constant 0.000000e+00 : f32
      %41 = vector.broadcast %cst_28 : f32 to vector<3x32xf32>
      %c0_29 = arith.constant 0 : index
      %c0_30 = arith.constant 0 : index
      %42 = vector.load %arg9[%c0_29, %c0_30] : memref<3x32xf32, #tpu.memory_space<vmem>>, vector<3x32xf32>
      tpu.vector_store %arg9[%c0_29, %c0_30], %41 {strides = array<i32>} : memref<3x32xf32, #tpu.memory_space<vmem>>, vector<3x32xf32>,
      %cst_31 = arith.constant 0.000000e+00 : f32
      %43 = vector.broadcast %cst_31 : f32 to vector<3x4xf32>
      %c0_32 = arith.constant 0 : index
      %c0_33 = arith.constant 0 : index
      %44 = vector.load %arg10[%c0_32, %c0_33] : memref<3x4xf32, #tpu.memory_space<vmem>>, vector<3x4xf32>
      tpu.vector_store %arg10[%c0_32, %c0_33], %43 {strides = array<i32>} : memref<3x4xf32, #tpu.memory_space<vmem>>, vector<3x4xf32>,
      %cst_34 = arith.constant 0.000000e+00 : f32
      %45 = vector.broadcast %cst_34 : f32 to vector<3x1xf32>
      %c0_35 = arith.constant 0 : index
      %c0_36 = arith.constant 0 : index
      %46 = vector.load %arg11[%c0_35, %c0_36] : memref<3x1xf32, #tpu.memory_space<vmem>>, vector<3x1xf32>
      tpu.vector_store %arg11[%c0_35, %c0_36], %45 {strides = array<i32>} : memref<3x1xf32, #tpu.memory_space<vmem>>, vector<3x1xf32>,
    } else {
    }
    %c0 = arith.constant 0 : index
    %c0_1 = arith.constant 0 : index
    %3 = vector.load %arg2[%c0, %c0_1] : memref<16x32xbf16, #tpu.memory_space<vmem>>, vector<16x32xbf16>
    %4 = arith.extf %3 : vector<16x32xbf16> to vector<16x32xf32>
    %c0_2 = arith.constant 0 : index
    %c0_3 = arith.constant 0 : index
    %5 = vector.load %arg3[%c0_2, %c0_3] : memref<16x4xbf16, #tpu.memory_space<vmem>>, vector<16x4xbf16>
    %6 = arith.extf %5 : vector<16x4xbf16> to vector<16x4xf32>
    %c0_4 = arith.constant 0 : index
    %c0_5 = arith.constant 0 : index
    %7 = vector.load %arg1[%c0_4, %c0_5] : memref<16x1xi32, #tpu.memory_space<vmem>>, vector<16x1xi32>
    %c0_6 = arith.constant 0 : index
    %c0_7 = arith.constant 0 : index
    %8 = vector.load %arg4[%c0_6, %c0_7] : memref<32x1xf32, #tpu.memory_space<vmem>>, vector<32x1xf32>
    %cst = arith.constant dense<0.000000e+00> : vector<16x1xf32>
    %9 = tpu.matmul %4, %8, %cst {dimension_numbers = #tpu.dot_dimension_numbers<[1], [0], [0], [1], [0, 0, 1, 1], [], []>} : vector<16x32xf32>, vector<32x1xf32>, vector<16x1xf32> -> vector<16x1xf32>
    %c0_8 = arith.constant 0 : index
    %c0_9 = arith.constant 0 : index
    %10 = memref.load %arg5[%c0_8, %c0_9] : memref<1x1xf32, #tpu.memory_space<smem>>
    %11 = vector.broadcast %10 : f32 to vector<16x1xf32>
    %12 = arith.addf %9, %11 : vector<16x1xf32>
    %13 = arith.negf %12 : vector<16x1xf32>
    %14 = math.exp %13 : vector<16x1xf32>
    %cst_10 = arith.constant 1.000000e+00 : f32
    %15 = vector.broadcast %cst_10 : f32 to vector<16x1xf32>
    %16 = arith.addf %15, %14 : vector<16x1xf32>
    %17 = arith.divf %15, %16 : vector<16x1xf32>
    %18 = vector.broadcast %17 : vector<16x1xf32> to vector<16x32xf32>
    %19 = arith.mulf %18, %4 : vector<16x32xf32>
    %20 = tpu.iota {dimensions = array<i32: 1>} : vector<16x3xi32>
    %21 = vector.broadcast %7 : vector<16x1xi32> to vector<16x3xi32>
    %22 = arith.cmpi eq, %20, %21 : vector<16x3xi32>
    %23 = arith.extui %22 : vector<16x3xi1> to vector<16x3xi32>
    %24 = arith.sitofp %23 : vector<16x3xi32> to vector<16x3xf32>
    %c0_11 = arith.constant 0 : index
    %c0_12 = arith.constant 0 : index
    %25 = vector.load %arg9[%c0_11, %c0_12] : memref<3x32xf32, #tpu.memory_space<vmem>>, vector<3x32xf32>
    %cst_13 = arith.constant dense<0.000000e+00> : vector<3x32xf32>
    %26 = tpu.matmul %24, %19, %cst_13 {dimension_numbers = #tpu.dot_dimension_numbers<[0], [0], [1], [1], [0, 1, 1, 1], [], []>} : vector<16x3xf32>, vector<16x32xf32>, vector<3x32xf32> -> vector<3x32xf32>
    %27 = arith.addf %25, %26 : vector<3x32xf32>
    %c0_14 = arith.constant 0 : index
    %c0_15 = arith.constant 0 : index
    %28 = vector.load %arg9[%c0_14, %c0_15] : memref<3x32xf32, #tpu.memory_space<vmem>>, vector<3x32xf32>
    tpu.vector_store %arg9[%c0_14, %c0_15], %27 {strides = array<i32>} : memref<3x32xf32, #tpu.memory_space<vmem>>, vector<3x32xf32>,
    %c0_16 = arith.constant 0 : index
    %c0_17 = arith.constant 0 : index
    %29 = vector.load %arg10[%c0_16, %c0_17] : memref<3x4xf32, #tpu.memory_space<vmem>>, vector<3x4xf32>
    %cst_18 = arith.constant dense<0.000000e+00> : vector<3x4xf32>
    %30 = tpu.matmul %24, %6, %cst_18 {dimension_numbers = #tpu.dot_dimension_numbers<[0], [0], [1], [1], [0, 1, 1, 1], [], []>} : vector<16x3xf32>, vector<16x4xf32>, vector<3x4xf32> -> vector<3x4xf32>
    %31 = arith.addf %29, %30 : vector<3x4xf32>
    %c0_19 = arith.constant 0 : index
    %c0_20 = arith.constant 0 : index
    %32 = vector.load %arg10[%c0_19, %c0_20] : memref<3x4xf32, #tpu.memory_space<vmem>>, vector<3x4xf32>
    tpu.vector_store %arg10[%c0_19, %c0_20], %31 {strides = array<i32>} : memref<3x4xf32, #tpu.memory_space<vmem>>, vector<3x4xf32>,
    %c0_21 = arith.constant 0 : index
    %c0_22 = arith.constant 0 : index
    %33 = vector.load %arg11[%c0_21, %c0_22] : memref<3x1xf32, #tpu.memory_space<vmem>>, vector<3x1xf32>
    %cst_23 = arith.constant 1.000000e+00 : f32
    %34 = vector.broadcast %cst_23 : f32 to vector<16x1xf32>
    %cst_24 = arith.constant dense<0.000000e+00> : vector<3x1xf32>
    %35 = tpu.matmul %24, %34, %cst_24 {dimension_numbers = #tpu.dot_dimension_numbers<[0], [0], [1], [1], [0, 1, 1, 1], [], []>} : vector<16x3xf32>, vector<16x1xf32>, vector<3x1xf32> -> vector<3x1xf32>
    %36 = arith.addf %33, %35 : vector<3x1xf32>
    %c0_25 = arith.constant 0 : index
    %c0_26 = arith.constant 0 : index
    %37 = vector.load %arg11[%c0_25, %c0_26] : memref<3x1xf32, #tpu.memory_space<vmem>>, vector<3x1xf32>
    tpu.vector_store %arg11[%c0_25, %c0_26], %36 {strides = array<i32>} : memref<3x1xf32, #tpu.memory_space<vmem>>, vector<3x1xf32>,
    %c1_i32 = arith.constant 1 : i32
    %38 = arith.cmpi eq, %arg0, %c1_i32 : i32
    %39 = arith.extui %38 : i1 to i32
    %c0_i32_27 = arith.constant 0 : i32
    %40 = arith.cmpi ne, %39, %c0_i32_27 : i32
    scf.if %40 {
      %c0_28 = arith.constant 0 : index
      %c0_29 = arith.constant 0 : index
      %41 = vector.load %arg11[%c0_28, %c0_29] : memref<3x1xf32, #tpu.memory_space<vmem>>, vector<3x1xf32>
      %42 = tpu.reciprocal %41 : vector<3x1xf32> -> vector<3x1xf32>
      %c0_30 = arith.constant 0 : index
      %c0_31 = arith.constant 0 : index
      %43 = vector.load %arg9[%c0_30, %c0_31] : memref<3x32xf32, #tpu.memory_space<vmem>>, vector<3x32xf32>
      %44 = vector.broadcast %42 : vector<3x1xf32> to vector<3x32xf32>
      %45 = arith.mulf %43, %44 : vector<3x32xf32>
      %c0_32 = arith.constant 0 : index
      %c0_33 = arith.constant 0 : index
      %46 = vector.load %arg10[%c0_32, %c0_33] : memref<3x4xf32, #tpu.memory_space<vmem>>, vector<3x4xf32>
      %47 = vector.broadcast %42 : vector<3x1xf32> to vector<3x4xf32>
      %48 = arith.mulf %46, %47 : vector<3x4xf32>
      %c0_34 = arith.constant 0 : index
      %c0_35 = arith.constant 0 : index
      %49 = vector.load %arg6[%c0_34, %c0_35] : memref<32x4xf32, #tpu.memory_space<vmem>>, vector<32x4xf32>
      %cst_36 = arith.constant dense<0.000000e+00> : vector<3x4xf32>
      %50 = tpu.matmul %45, %49, %cst_36 {dimension_numbers = #tpu.dot_dimension_numbers<[1], [0], [0], [1], [0, 0, 1, 1], [], []>} : vector<3x32xf32>, vector<32x4xf32>, vector<3x4xf32> -> vector<3x4xf32>
      %c0_37 = arith.constant 0 : index
      %c0_38 = arith.constant 0 : index
      %51 = vector.load %arg7[%c0_37, %c0_38] : memref<1x4xf32, #tpu.memory_space<vmem>>, vector<1x4xf32>
      %52 = vector.broadcast %51 : vector<1x4xf32> to vector<3x4xf32>
      %53 = arith.addf %50, %52 : vector<3x4xf32>
      %cst_39 = arith.constant dense<0xFF800000> : vector<3xf32>
      %54 = vector.multi_reduction <maximumf>, %53, %cst_39 [1] : vector<3x4xf32> to vector<3xf32>
      %55 = vector.shape_cast %54 : vector<3xf32> to vector<3x1xf32>
      %56 = vector.broadcast %55 : vector<3x1xf32> to vector<3x4xf32>
      %57 = arith.subf %53, %56 : vector<3x4xf32>
      %58 = math.exp %57 : vector<3x4xf32>
      %cst_40 = arith.constant dense<0.000000e+00> : vector<3xf32>
      %59 = vector.multi_reduction <add>, %58, %cst_40 [1] : vector<3x4xf32> to vector<3xf32>
      %60 = vector.shape_cast %59 : vector<3xf32> to vector<3x1xf32>
      %61 = tpu.reciprocal %60 : vector<3x1xf32> -> vector<3x1xf32>
      %62 = vector.broadcast %61 : vector<3x1xf32> to vector<3x4xf32>
      %63 = arith.mulf %58, %62 : vector<3x4xf32>
      %cst_41 = arith.constant dense<0xFF800000> : vector<3xf32>
      %64 = vector.multi_reduction <maximumf>, %63, %cst_41 [1] : vector<3x4xf32> to vector<3xf32>
      %65 = vector.shape_cast %64 : vector<3xf32> to vector<3x1xf32>
      %66 = vector.broadcast %65 : vector<3x1xf32> to vector<3x4xf32>
      %67 = arith.subf %63, %66 : vector<3x4xf32>
      %68 = math.exp %67 : vector<3x4xf32>
      %cst_42 = arith.constant dense<0.000000e+00> : vector<3xf32>
      %69 = vector.multi_reduction <add>, %68, %cst_42 [1] : vector<3x4xf32> to vector<3xf32>
      %70 = vector.shape_cast %69 : vector<3xf32> to vector<3x1xf32>
      %71 = math.log %70 : vector<3x1xf32>
      %72 = vector.broadcast %71 : vector<3x1xf32> to vector<3x4xf32>
      %73 = arith.subf %67, %72 : vector<3x4xf32>
      %74 = arith.mulf %48, %73 : vector<3x4xf32>
      %cst_43 = arith.constant dense<0.000000e+00> : vector<3xf32>
      %75 = vector.multi_reduction <add>, %74, %cst_43 [1] : vector<3x4xf32> to vector<3xf32>
      %76 = vector.shape_cast %75 : vector<3xf32> to vector<3x1xf32>
      %cst_44 = arith.constant 0.000000e+00 : f32
      %77 = vector.broadcast %cst_44 : f32 to vector<3x1xf32>
      %78 = arith.subf %77, %76 : vector<3x1xf32>
      %cst_45 = arith.constant dense<0.000000e+00> : vector<1xf32>
      %79 = vector.multi_reduction <add>, %78, %cst_45 [0] : vector<3x1xf32> to vector<1xf32>
      %80 = vector.shape_cast %79 : vector<1xf32> to vector<1x1xf32>
      %cst_46 = arith.constant 1.000000e+00 : f32
      %cst_47 = arith.constant 3.000000e+00 : f32
      %81 = arith.divf %cst_46, %cst_47 : f32
      %82 = vector.broadcast %81 : f32 to vector<1x1xf32>
      %83 = arith.mulf %80, %82 : vector<1x1xf32>
      %c0_48 = arith.constant 0 : index
      %c0_49 = arith.constant 0 : index
      %84 = vector.load %arg8[%c0_48, %c0_49] : memref<1x1xf32, #tpu.memory_space<vmem>>, vector<1x1xf32>
      tpu.vector_store %arg8[%c0_48, %c0_49], %83 {strides = array<i32>} : memref<1x1xf32, #tpu.memory_space<vmem>>, vector<1x1xf32>,
    } else {
    }
    return
  }
  func.func @transform_0(%arg0: i32) -> (i32, i32) {
    %c0_i32 = arith.constant 0 : i32
    %c0_i32_0 = arith.constant 0 : i32
    return %arg0, %c0_i32 : i32, i32
  }
  func.func @transform_1(%arg0: i32) -> (i32, i32) {
    %c0_i32 = arith.constant 0 : i32
    %c0_i32_0 = arith.constant 0 : i32
    return %arg0, %c0_i32 : i32, i32
  }
  func.func @transform_2(%arg0: i32) -> (i32, i32) {
    %c0_i32 = arith.constant 0 : i32
    %c0_i32_0 = arith.constant 0 : i32
    return %arg0, %c0_i32 : i32, i32
  }
  func.func @transform_3(%arg0: i32) -> (i32, i32) {
    %c0_i32 = arith.constant 0 : i32
    %c0_i32_0 = arith.constant 0 : i32
    %c0_i32_1 = arith.constant 0 : i32
    return %c0_i32, %c0_i32_0 : i32, i32
  }
  func.func @transform_4(%arg0: i32) -> (i32, i32) {
    %c0_i32 = arith.constant 0 : i32
    %c0_i32_0 = arith.constant 0 : i32
    %c0_i32_1 = arith.constant 0 : i32
    return %c0_i32, %c0_i32_0 : i32, i32
  }
  func.func @transform_5(%arg0: i32) -> (i32, i32) {
    %c0_i32 = arith.constant 0 : i32
    %c0_i32_0 = arith.constant 0 : i32
    %c0_i32_1 = arith.constant 0 : i32
    return %c0_i32, %c0_i32_0 : i32, i32
  }
  func.func @transform_6(%arg0: i32) -> (i32, i32) {
    %c0_i32 = arith.constant 0 : i32
    %c0_i32_0 = arith.constant 0 : i32
    %c0_i32_1 = arith.constant 0 : i32
    return %c0_i32, %c0_i32_0 : i32, i32
  }
  func.func @transform_7(%arg0: i32) -> (i32, i32) {
    %c0_i32 = arith.constant 0 : i32
    %c0_i32_0 = arith.constant 0 : i32
    %c0_i32_1 = arith.constant 0 : i32
    return %c0_i32, %c0_i32_0 : i32, i32
  }
}

</mosaic_0001>

<bundles_post_ra>
// kernel: tpu_custom_call.1
= control target key start
LH: loop header
LB: loop body
LE: loop exit
PB: predicated region body
PF: predicated region fallthrough
CT: control target
= control target key end

     0   :  { %s968_s0 = inlined_call_operand.vmem [shape: s32[32,1], index: 0, kind: input, shape index: {}]   ;;  %s969_s1 = inlined_call_operand.vmem [shape: bf16[32,32], index: 1, kind: input, shape index: {}]   ;;  %s970_s2 = inlined_call_operand.vmem [shape: bf16[32,4], index: 2, kind: input, shape index: {}]   ;;  %s971_s3 = inlined_call_operand.vmem [shape: f32[32,1], index: 3, kind: input, shape index: {}]   ;;  %s972_s4 = inlined_call_operand.<no memory space> [shape: f32[1,1], index: 4, kind: input, shape index: {}]   ;;  %s973_s5 = inlined_call_operand.vmem [shape: f32[32,4], index: 5, kind: input, shape index: {}]   ;;  %s974_s6 = inlined_call_operand.vmem [shape: f32[1,4], index: 6, kind: input, shape index: {}]   ;;  %s975_s7 = inlined_call_operand.hbm [shape: f32[1,1], index: 7, kind: output, shape index: {}]  }
   0x1   :  { %12 = sst [smem:[#allocation5]] %s972_s4 }
   0x2   :  { %13 = vsyncpa [#allocation7], 0  ;;  %s888_s26 = smov 0  }
   0x3 LB: > { %s894_s27 = sadd.s32 4294967295, %s837_s26   ;;  %p726_p0 = scmp.ge.s32.totalorder %s837_s26, 1  ;;  %s837_s26 = sphi %s888_s26, %s19_s26  }
   0x4   : > { %p257_p1 = scmp.lt.s32.totalorder %s837_s26, 3 }
   0x6   : > { %p258_p2 = pnand %p726_p0, %p257_p1 }
   0x7   : > { %s727_s28 = sshll.u32 (!%p258_p2), %s894_s27, 1  ;;  %p733_p4 = scmp.ne.s32.totalorder (!%p258_p2), %s894_s27, 0 }
   0x8   : > { %261 = sbr.rel (%p258_p2) target bundleno = 1374 (0x55e), region = 48  ;;  %p295_p3 = scmp.lt.s32.totalorder (!%p258_p2), %s727_s28, 3 }
   0xd   : > { %s977_s28 = smov (!%p295_p3, %s727_s28), 3  ;;  %315 = sbr.rel (%p733_p4) target bundleno = 22 (0x16), region = 52 }
   0xe   : > { %s728_s4 = sshll.u32 %s977_s28, 3  ;;  %s730_s29 = sshll.u32 %s977_s28, 2 }
   0xf   : > { %s298_s9 = scalar_lea.vmem %s968_s0, %s728_s4  ;;  %s304_s12 = scalar_lea.vmem %s969_s1, %s730_s29 }
  0x10   : > { %s908_s15 = scalar_lea.vmem %s970_s2, %s730_s29 }
  0x12   : > { %vm316_vm0 = vcmask 256000   ;;  %vm318_vm1 = vcmask 26624   ;;  %vm320_vm2 = vcmask 2048   ;;  %v839_v0 = vmov 0.0  }
  0x13   : > { %317 = vst.msk [vmem:[#allocation2] sm:$0x7] %vm316_vm0, %v839_v0 }
  0x14   : > { %319 = vst.msk [vmem:[#allocation3] sm:$0x7] %vm318_vm1, %v839_v0 }
  0x15   : > { %321 = vst.msk [vmem:[#allocation4] sm:$0x7] %vm320_vm2, %v839_v0 }
  0x16 PF: > { %v335_v1 = vld [vmem:[%s971_s3 + $0x18] sm:$0xff]  ;;  %v334_v2 = vld [vmem:[%s971_s3 + $0x10] sm:$0xff]  ;;  %v917_v3 = vld [vmem:[%s304_s12] sm:$0xff]   ;;  %v840_v4 = vmov 0   ;;  %vm338_vm3 = vcmask 261120   ;;  %v418_v11 = vlaneseq  ;;  %v841_v14 = vmov 0.0  }
  0x17   : > { %357 = vmatpush.msra.mxu0 %v335_v1  ;;  %777 = vset.pattern.permute.xlu0 %v840_v4  ;;  %v330_v5 = vld [vmem:[%s298_s9] sm:$0xff]  ;;  %v333_v6 = vld [vmem:[%s971_s3 + $0x8] sm:$0xff]  ;;  %v751_v8 = vunpack.c.l.bf16 %v917_v3  ;;  %v752_v10 = vunpack.c.h.bf16 %v917_v3  ;;  %s336_s24 = sld [smem:[#allocation5]]  ;;  %v842_v51 = vmov 1.0   ;;  %vm465_vm14 = vcmask 130048   ;;  %p743_p5 = scmp.ne.s32.totalorder %s894_s27, 1 }
  0x18   : > { %421 = vperm.xlu0 %777, %v330_v5   ;;  %778 = vset.pattern.permute.xlu1 %v840_v4  ;;  %v332_v7 = vld [vmem:[%s971_s3] sm:$0xff]  ;;  %v331_v9 = vld [vmem:[%s298_s9 + $0x8] sm:$0xff]  ;;  %v419_v12 = vand.u32 127, %v418_v11  ;;  %vm514_vm15 = vcmask 26624   ;;  %vm538_vm0 = vcmask 2048   ;;  %vm490_vm1 = vcmask 256000  }
  0x19   : > { %358 = vmatpush.msra.mxu0 %v334_v2  ;;  %v754_v49 = vld [vmem:[%s908_s15] sm:$0xff]   ;;  %531 = vmatpush.msra.mxu3 %v842_v51 }
  0x1a   : > { %v756_v50 = vunpack.c.h.bf16 %v754_v49  ;;  %v755_v52 = vunpack.c.l.bf16 %v754_v49  ;;  %v432_v0 = vld [vmem:[#allocation2] sm:$0x7] }
  0x1b   : > { %359 = vmatpush.msra.mxu0 %v333_v6  ;;  %532 = vmatpush.msra.mxu3 %v842_v51  ;;  %v492_v58 = vld [vmem:[#allocation3] sm:$0x7] }
  0x1c   : > { %507 = vmatpush.msra.mxu2 %v756_v50  ;;  %v516_v59 = vld [vmem:[#allocation4] sm:$0x7] }
  0x1d   : > { %360 = vmatpush.msra.mxu0 %v332_v7  ;;  %v337_v18 = vstv %s336_s24 }
  0x1e   : > { %734 = vmatmul.msk.f32.vlgmr.msra.gmra.mxu0 %vm338_vm3, %v751_v8  ;;  %508 = vmatpush.msra.mxu2 %v755_v52 }
  0x20   : > { %424 = vperm.xlu0 %777, %v331_v9  }
  0x26   : > { %735 = vmatmul.msk.f32.gmra.mxu0 %vm338_vm3, %v752_v10 }
  0x8a   : > { %v422_v13 = vpop.permute.xlu0 %421 }
  0x8b   : > { %vm426_vm4 = vcmp.eq.s32.totalorder %v419_v12, %v422_v13 }
  0x8c   : > { %v738_v15 = vsel %vm426_vm4, 1.0, %v841_v14 }
  0x8d   : > { %433 = vxpose.xlu2.b32.start [1/2] (short) (narrow) %v738_v15, 8 }
  0x92   : > { %v425_v16 = vpop.permute.xlu0 %424 }
  0x93   : > { %vm427_vm5 = vcmp.eq.s32.totalorder %v419_v12, %v425_v16 }
  0x94   : > { %v739_v17 = vsel %vm427_vm5, 1.0, %v841_v14 }
  0x95   : > { %434 = vxpose.xlu2.b32.end [2/2] (short) (narrow) %v739_v17, 8 }
  0x9b   : > { %v362_v19 = vpop.f32.mrf.mxu0 }
  0x9c   : > { %v363_v20 = vadd.f32 %v362_v19, %v337_v18 }
  0x9e   : > { %v736_v21 = vmul.f32 -1.442695, %v363_v20 }
  0xa0   : > { %779 = vpow2.f32 %v736_v21 }
  0xa3   : > { %v365_v22 = vpop.f32.mrf.mxu0 }
  0xa4   : > { %v366_v23 = vadd.f32 %v365_v22, %v337_v18 }
  0xa6   : > { %v780_v24 = vpop.eup %779  ;;  %v737_v25 = vmul.f32 -1.442695, %v366_v23 }
  0xa7   : > { %v374_v26 = vadd.f32 1.0, %v780_v24 }
  0xa8   : > { %781 = vpow2.f32 %v737_v25 }
  0xa9   : > { %783 = vrcp.f32 %v374_v26  ;;  %v387_v44 = vand.u32 2147483648, %v374_v26  ;;  %vm381_vm11 = vweird.f32 %v374_v26  ;;  %v385_v45 = vand.u32 2147483647, %v374_v26 }
  0xab   : > { %v388_v47 = vor.u32 1.1754944e-38, %v387_v44  ;;  %vm386_vm13 = vcmp.eq.f32.partialorder %v385_v45, 8.507059e+37 }
  0xae   : > { %v782_v27 = vpop.eup %781 }
  0xaf   : > { %v375_v28 = vadd.f32 1.0, %v782_v27  ;;  %v784_v29 = vpop.eup %783 }
  0xb0   : > { %v377_v30 = vmul.f32 %v784_v29, %v374_v26  ;;  %vm382_vm10 = vweird.f32 %v784_v29 }
  0xb1   : > { %785 = vrcp.f32 %v375_v28  ;;  %v402_v35 = vand.u32 2147483648, %v375_v28  ;;  %v400_v37 = vand.u32 2147483647, %v375_v28  ;;  %vm396_vm7 = vweird.f32 %v375_v28  ;;  %vm383_vm12 = vmor %vm381_vm11, %vm382_vm10 }
  0xb2   : > { %v378_v34 = vsub.f32 1.0, %v377_v30 }
  0xb3   : > { %v403_v40 = vor.u32 1.1754944e-38, %v402_v35  ;;  %vm401_vm9 = vcmp.eq.f32.partialorder %v400_v37, 8.507059e+37 }
  0xb4   : > { %v379_v39 = vmul.f32 %v784_v29, %v378_v34 }
  0xb6   : > { %v380_v43 = vadd.f32 %v784_v29, %v379_v39 }
  0xb7   : > { %v786_v31 = vpop.eup %785 }
  0xb8   : > { %v392_v32 = vmul.f32 %v786_v31, %v375_v28  ;;  %vm397_vm6 = vweird.f32 %v786_v31  ;;  %v384_v46 = vsel %vm383_vm12, %v784_v29, %v380_v43 }
  0xb9   : > { %vm398_vm8 = vmor %vm396_vm7, %vm397_vm6  ;;  %v389_v48 = vsel %vm386_vm13, %v388_v47, %v384_v46 }
  0xba   : > { %v393_v33 = vsub.f32 1.0, %v392_v32 }
  0xbc   : > { %v394_v36 = vmul.f32 %v786_v31, %v393_v33 }
  0xbe   : > { %v395_v38 = vadd.f32 %v786_v31, %v394_v36 }
  0xc0   : > { %v399_v41 = vsel %vm398_vm8, %v786_v31, %v395_v38 }
  0xc1   : > { %v404_v42 = vsel %vm401_vm9, %v403_v40, %v399_v41 }
  0xc2   : > { %413 = vperm.xlu1 %778, %v404_v42  }
  0xca   : > { %408 = vperm.xlu1 %778, %v389_v48  }
 0x126   : > { %v449_v53 = vpop.trf.xlu2 }
 0x127   : > { %741 = vmatmul.msk.f32.vlgmr.msra.gmra.mxu2 %vm465_vm14, %v449_v53  ;;  %742 = vmatmul.msk.f32.vlgmr.msra.gmra.mxu3 %vm465_vm14, %v449_v53 }
 0x134   : > { %v414_v54 = vpop.permute.xlu1 %413 }
 0x135   : > { %v417_v55 = vmul.f32 %v752_v10, %v414_v54 }
 0x137   : > { %483 = vmatpush.msra.mxu1 %v417_v55 }
 0x13c   : > { %v409_v56 = vpop.permute.xlu1 %408 }
 0x13d   : > { %v416_v57 = vmul.f32 %v751_v8, %v409_v56 }
 0x13f   : > { %484 = vmatpush.msra.mxu1 %v416_v57 }
 0x140   : > { %740 = vmatmul.msk.f32.vlgmr.msra.gmra.mxu1 %vm465_vm14, %v449_v53 }
 0x1aa   : > { %v510_v60 = vpop.f32.mrf.mxu2  ;;  %v534_v61 = vpop.f32.mrf.mxu3 }
 0x1ab   : > { %v513_v62 = vadd.f32 %v510_v60, %v492_v58  ;;  %v537_v63 = vadd.f32 %v534_v61, %v516_v59 }
 0x1ad   : > { %515 = vst.msk [vmem:[#allocation3] sm:$0x7] %vm514_vm15, %v513_v62 }
 0x1ae   : > { %539 = vst.msk [vmem:[#allocation4] sm:$0x7] %vm538_vm0, %v537_v63 }
 0x1bc   : > { %543 = sbr.rel (%p743_p5) target bundleno = 1369 (0x559), region = 56 }
 0x1bd   : > { %v486_v1 = vpop.f32.mrf.mxu1 }
 0x1be   : > { %v489_v2 = vadd.f32 %v486_v1, %v432_v0 }
 0x1c0   : > { %491 = vst.msk [vmem:[#allocation2] sm:$0x7] %vm490_vm1, %v489_v2 }
 0x1c1   : > { %v544_v3 = vld [vmem:[#allocation4] sm:$0x7]  ;;  %v571_v4 = vld [vmem:[%s973_s5 + $0x18] sm:$0xff]  ;;  %v570_v5 = vld [vmem:[%s973_s5 + $0x10] sm:$0xff]  ;;  %v843_v6 = vmov 0   ;;  %vm640_vm10 = vcmask 1042432  }
 0x1c2   : > { %787 = vset.pattern.permute.xlu0 %v843_v6  ;;  %789 = vrcp.f32 %v544_v3  ;;  %591 = vmatpush.msra.mxu0 %v571_v4  ;;  %v569_v7 = vld [vmem:[%s973_s5 + $0x8] sm:$0xff]  ;;  %v556_v10 = vand.u32 2147483648, %v544_v3  ;;  %vm550_vm2 = vweird.f32 %v544_v3  ;;  %v554_v12 = vand.u32 2147483647, %v544_v3  ;;  %v568_v18 = vld [vmem:[%s973_s5] sm:$0xff] }
 0x1c3   : > { %v788_v22 = vld [vmem:[%s974_s6] ss:$0 sm:$0xff]  ;;  %v566_v51 = vld [vmem:[#allocation3] sm:$0x7]  ;;  %vm649_vm11 = vcmask 0  }
 0x1c4   : > { %592 = vmatpush.msra.mxu0 %v570_v5  ;;  %v557_v14 = vor.u32 1.1754944e-38, %v556_v10  ;;  %vm555_vm6 = vcmp.eq.f32.partialorder %v554_v12, 8.507059e+37 }
 0x1c6   : > { %593 = vmatpush.msra.mxu0 %v569_v7 }
 0x1c7   : > { %v559_v19 = vld [vmem:[#allocation2] sm:$0x7] }
 0x1c8   : > { %v790_v8 = vpop.eup %789  ;;  %594 = vmatpush.msra.mxu0 %v568_v18 }
 0x1c9   : > { %v546_v9 = vmul.f32 %v790_v8, %v544_v3  ;;  %vm551_vm4 = vweird.f32 %v790_v8 }
 0x1ca   : > { %vm552_vm5 = vmor %vm550_vm2, %vm551_vm4 }
 0x1cb   : > { %v547_v11 = vsub.f32 1.0, %v546_v9 }
 0x1cd   : > { %v548_v13 = vmul.f32 %v790_v8, %v547_v11 }
 0x1cf   : > { %v549_v15 = vadd.f32 %v790_v8, %v548_v13 }
 0x1d1   : > { %v553_v16 = vsel %vm552_vm5, %v790_v8, %v549_v15 }
 0x1d2   : > { %v558_v17 = vsel %vm555_vm6, %v557_v14, %v553_v16 }
 0x1d3   : > { %562 = vperm.xlu0 %787, %v558_v17  }
 0x245   : > { %v563_v20 = vpop.permute.xlu0 %562 }
 0x246   : > { %v565_v21 = vmul.f32 %v563_v20, %v559_v19  ;;  %v567_v53 = vmul.f32 %v566_v51, %v563_v20 }
 0x248   : > { %744 = vmatmul.msk.f32.vlgmr.msra.gmra.mxu0 %vm338_vm3, %v565_v21 }
 0x2c5   : > { %v596_v23 = vpop.f32.mrf.mxu0 }
 0x2c6   : > { %v597_v24 = vadd.f32 %v788_v22, %v596_v23 }
 0x2c8   : > { %v599_v25 = vsel %vm514_vm15, %v597_v24, -inf }
 0x2c9   : > { %600 = vmax.xlane.f32.xlu0 %v599_v25 }
 0x33c   : > { %v601_v26 = vpop.xlane.xlu0 %600 }
 0x33d   : > { %v602_v27 = vsub.f32 %v597_v24, %v601_v26 }
 0x33f   : > { %v603_v28 = vmul.f32 1.442695, %v602_v27 }
 0x341   : > { %791 = vpow2.f32 %v603_v28 }
 0x347   : > { %v792_v29 = vpop.eup %791 }
 0x348   : > { %v605_v30 = vsel %vm514_vm15, %v792_v29, 0.0 }
 0x349   : > { %606 = vadd.xlane.f32.xlu1 %v605_v30 }
 0x3bc   : > { %v607_v31 = vpop.xlane.xlu1 %606 }
 0x3bd   : > { %793 = vrcp.f32 %v607_v31  ;;  %v619_v35 = vand.u32 2147483648, %v607_v31  ;;  %v617_v37 = vand.u32 2147483647, %v607_v31  ;;  %vm613_vm7 = vweird.f32 %v607_v31 }
 0x3bf   : > { %v620_v39 = vor.u32 1.1754944e-38, %v619_v35  ;;  %vm618_vm9 = vcmp.eq.f32.partialorder %v617_v37, 8.507059e+37 }
 0x3c3   : > { %v794_v32 = vpop.eup %793 }
 0x3c4   : > { %v609_v33 = vmul.f32 %v794_v32, %v607_v31  ;;  %vm614_vm3 = vweird.f32 %v794_v32 }
 0x3c5   : > { %vm615_vm8 = vmor %vm613_vm7, %vm614_vm3 }
 0x3c6   : > { %v610_v34 = vsub.f32 1.0, %v609_v33 }
 0x3c8   : > { %v611_v36 = vmul.f32 %v794_v32, %v610_v34 }
 0x3ca   : > { %v612_v38 = vadd.f32 %v794_v32, %v611_v36 }
 0x3cc   : > { %v616_v40 = vsel %vm615_vm8, %v794_v32, %v612_v38 }
 0x3cd   : > { %v621_v41 = vsel %vm618_vm9, %v620_v39, %v616_v40 }
 0x3ce   : > { %v622_v42 = vmul.f32 %v792_v29, %v621_v41 }
 0x3d0   : > { %v623_v43 = vsel %vm514_vm15, %v622_v42, -inf }
 0x3d1   : > { %624 = vmax.xlane.f32.xlu1 %v623_v43 }
 0x444   : > { %v625_v44 = vpop.xlane.xlu1 %624 }
 0x445   : > { %v626_v45 = vsub.f32 %v622_v42, %v625_v44 }
 0x447   : > { %v627_v46 = vmul.f32 1.442695, %v626_v45 }
 0x449   : > { %795 = vpow2.f32 %v627_v46 }
 0x44f   : > { %v796_v47 = vpop.eup %795 }
 0x450   : > { %v629_v48 = vsel %vm514_vm15, %v796_v47, 0.0 }
 0x451   : > { %630 = vadd.xlane.f32.xlu2 %v629_v48 }
 0x4c4   : > { %v631_v49 = vpop.xlane.xlu2 %630 }
 0x4c5   : > { %797 = vlog2.f32 %v631_v49 }
 0x4cb   : > { %v798_v50 = vpop.eup %797 }
 0x4cc   : > { %v633_v52 = vmul.f32 0.6931472, %v798_v50 }
 0x4ce   : > { %v634_v54 = vsub.f32 %v626_v45, %v633_v52 }
 0x4d0   : > { %v635_v55 = vmul.f32 %v634_v54, %v567_v53 }
 0x4d2   : > { %v636_v56 = vsel %vm514_vm15, %v635_v55, 0.0 }
 0x4d3   : > { %637 = vadd.xlane.f32.xlu2 %v636_v56 }
 0x546   : > { %v638_v57 = vpop.xlane.xlu2 %637 }
 0x547   : > { %v639_v58 = vsub.f32 0.0, %v638_v57 }
 0x549   : > { %v641_v59 = vsel %vm640_vm10, %v639_v58, 0.0 }
 0x54a   : > { %v642_v60 = vrot.slane %v641_v59, 4 }
 0x54c   : > { %v643_v61 = vadd.f32 %v642_v60, %v641_v59 }
 0x54e   : > { %v644_v62 = vrot.slane %v643_v61, 2 }
 0x550   : > { %v645_v63 = vadd.f32 %v644_v62, %v643_v61 }
 0x552   : > { %v646_v0 = vrot.slane %v645_v63, 1 }
 0x554   : > { %v647_v1 = vadd.f32 %v646_v0, %v645_v63 }
 0x556   : > { %v648_v2 = vmul.f32 0.33333334, %v647_v1 }
 0x558   : > { %650 = vst.msk [vmem:[#allocation6] sm:$0x1] %vm649_vm11, %v648_v2 }
 0x559 PF: > { %p761_p6 = scmp.eq.s32.totalorder %s894_s27, 1  ;;  %s844_s13 = smov [#allocation6]  }
 0x55a   : > { %s657_s14 = sshll.u32 %s844_s13, 4  ;;  %s659_s17 = sshll.u32 %s975_s7, 4  ;;  %s658_s14 = int_to_ptr.vmem [resolvable:$true] %s657_s14  ;;  %s660_s17 = int_to_ptr.hbm [resolvable:$true] %s659_s17 }
 0x55b   : > { %758 = dma.vmem_to_hbm [thread:$0]  (%p761_p6), %s658_s14, 16, %s660_s17, [#allocation7]  }
 0x55c   : > { %832 = dma.done.wait (%p761_p6), [#allocation7], 16  }
 0x55d   : > { %834 = vsyncadd (%p761_p6), [#allocation7], 4294967280 }
 0x55e PF: > { %s19_s26 = sadd.s32 1, %s837_s26  }
 0x55f   : > { %p16_p7 = scmp.ge.s32.totalorder %s19_s26, 4  }
 0x561   :  { %18 = sbr.rel (!%p16_p7) target bundleno = 3 (0x3), region = 89 }
 0x566   :  { %673 = vsyncpa [#allocation7], 1 }
 0x567   :  { %675 = vsyncpa [#allocation7 + $0x1], 1 }

</bundles_post_ra>
